<compile_context>
chip_gen: v7x
topology: tpu7x:2x2x1
jax: 0.10.0
libtpu: 0.0.40
codegen_flags: <defaults>
</compile_context>

<pallas_src>
import jax
import jax.numpy as jnp
from jax.experimental import pallas as pl
from jax.experimental.pallas import tpu as pltpu


_LANE_CANDIDATES = (2048, 1024, 512, 256, 128)
_TARGET_BLOCK_BYTES = 4 << 20      # ~4 MiB blocks: amortize per-step overhead;
                                   # ~16 MiB resident with in+out double-buffering
_SPLIT_THRESHOLD_BYTES = 2 << 20   # above this, guarantee >= 2 grid steps (v7x: 2 TCs)
_TINY_N = 128                      # below this, plain jnp (fusable, no call overhead)


def _squared_relu_kernel(x_ref, o_ref):
    # f32 math (safe on v5e, hidden under DMA); store in native dtype.
    z = x_ref[...].astype(jnp.float32)
    o_ref[...] = jnp.square(jnp.maximum(z, 0.0)).astype(o_ref.dtype)


def _squared_relu_jnp(x):
    z = x.astype(jnp.float32)
    return jnp.square(jnp.maximum(z, 0.0)).astype(x.dtype)


def _compiler_params(block_bytes):
    # Right-size the VMEM request from the block (in + out, double-buffered,
    # plus slack); never request the whole physical VMEM.
    vmem_limit = int(min(48 << 20, max(16 << 20, 6 * block_bytes)))
    return pltpu.CompilerParams(
        dimension_semantics=("parallel",),
        vmem_limit_bytes=vmem_limit,
    )


def _pick_lane(n):
    """Widest lane width (multiple of 128) that divides n exactly, else None."""
    for cand in _LANE_CANDIDATES:
        if n % cand == 0:
            return cand
    return None


def _sublane(itemsize):
    # dtype-native sublane packing: f32 -> 8, bf16/f16 -> 16, int8/fp8 -> 32
    return max(8, 32 // max(1, itemsize))


def _run_2d(x2d, rows, lane, itemsize):
    sublane = _sublane(itemsize)
    tile_rows = max(sublane, _TARGET_BLOCK_BYTES // (lane * itemsize))

    # v7x has 2 TensorCores: mid/large inputs must give the grid >= 2 steps
    # to shard (harmless on v5e/v6e).
    if rows * lane * itemsize > _SPLIT_THRESHOLD_BYTES:
        tile_rows = min(tile_rows, max(sublane, (rows // 2 // sublane) * sublane))

    if tile_rows >= rows:
        tile_rows = rows                      # single full-extent block (always legal)
    else:
        tile_rows = max(sublane, (tile_rows // sublane) * sublane)
        # Prefer a tile that divides rows exactly so the trailing block stays a
        # full, unmasked lane-dense store.
        if rows % tile_rows:
            t = tile_rows - sublane
            lo = max(sublane, tile_rows // 2)
            while t >= lo:
                if rows % t == 0:
                    tile_rows = t
                    break
                t -= sublane

    grid = (pl.cdiv(rows, tile_rows),)
    block_bytes = tile_rows * lane * itemsize
    return pl.pallas_call(
        _squared_relu_kernel,
        out_shape=jax.ShapeDtypeStruct((rows, lane), x2d.dtype),
        grid=grid,
        in_specs=[pl.BlockSpec((tile_rows, lane), lambda i: (i, 0))],
        out_specs=pl.BlockSpec((tile_rows, lane), lambda i: (i, 0)),
        compiler_params=_compiler_params(block_bytes),
    )(x2d)


def _run_1d(xf, n, itemsize):
    # Ragged flat sizes: run directly on the zero-copy 1D view. The trailing
    # partial block is masked by Pallas -- no pad/slice extra HBM passes.
    if n < 1024:
        block = n                                          # single full-extent block
    else:
        target_elems = _TARGET_BLOCK_BYTES // itemsize     # multiple of 1024
        block = min(target_elems, (n // 1024) * 1024)      # multiple of 8*128
        if n * itemsize > _SPLIT_THRESHOLD_BYTES and block * 2 > n:
            block = max(1024, ((n // 2) // 1024) * 1024)   # v7x: >= 2 grid steps

    grid = (pl.cdiv(n, block),)
    block_bytes = block * itemsize
    return pl.pallas_call(
        _squared_relu_kernel,
        out_shape=jax.ShapeDtypeStruct((n,), xf.dtype),
        grid=grid,
        in_specs=[pl.BlockSpec((block,), lambda i: (i,))],
        out_specs=pl.BlockSpec((block,), lambda i: (i,)),
        compiler_params=_compiler_params(block_bytes),
    )(xf)


def squared_relu(x):
    """Applies SquaredReLU(z) = max(z, 0)^2 elementwise. Any shape / float dtype."""
    orig_shape = x.shape
    n = x.size
    if n == 0:
        return x
    if n < _TINY_N:
        # Custom-call overhead would dominate; let XLA fuse it.
        return _squared_relu_jnp(x)

    itemsize = jnp.dtype(x.dtype).itemsize
    lane = _pick_lane(n)
    if lane is None:
        out = _run_1d(x.reshape(-1), n, itemsize)          # zero-copy 1D view
    else:
        rows = n // lane
        out = _run_2d(x.reshape(rows, lane), rows, lane, itemsize)
    return out.reshape(orig_shape)


if __name__ == "__main__":
    key = jax.random.PRNGKey(0)
    k0, k1, k2, k3, k4 = jax.random.split(key, 5)

    # Main test: small shape consistent with the module's elementwise spec.
    x = jax.random.normal(k0, (2, 4, 16, 16), dtype=jnp.float32)
    out = squared_relu(x)
    jax.block_until_ready(out)
    assert out.shape == x.shape and out.dtype == x.dtype
    assert jnp.allclose(out, _squared_relu_jnp(x), atol=1e-6, rtol=1e-6)

    # Ragged flat size (exercises the zero-copy 1D masked-tail path).
    x1 = jax.random.normal(k1, (5, 1031), dtype=jnp.float32)
    out1 = squared_relu(x1)
    jax.block_until_ready(out1)
    assert jnp.allclose(out1, _squared_relu_jnp(x1), atol=1e-6, rtol=1e-6)

    # Tiny ragged tensor (jnp fallback path).
    x2 = jax.random.normal(k2, (3, 5, 7), dtype=jnp.float32)
    out2 = squared_relu(x2)
    jax.block_until_ready(out2)
    assert jnp.allclose(out2, _squared_relu_jnp(x2), atol=1e-6, rtol=1e-6)

    # bf16 (native-dtype I/O, f32 math inside the kernel).
    x3 = jax.random.normal(k3, (4, 256), dtype=jnp.bfloat16)
    out3 = squared_relu(x3)
    jax.block_until_ready(out3)
    assert out3.dtype == jnp.bfloat16
    assert jnp.allclose(out3.astype(jnp.float32),
                        _squared_relu_jnp(x3).astype(jnp.float32),
                        atol=1e-2, rtol=1e-2)

    # Multi-block aligned slab (exercises the >= 2-step grid split path).
    x4 = jax.random.normal(k4, (1024, 2048), dtype=jnp.float32)
    out4 = squared_relu(x4)
    jax.block_until_ready(out4)
    assert jnp.allclose(out4, _squared_relu_jnp(x4), atol=1e-6, rtol=1e-6)

    print("KERNEL_OK")
</pallas_src>

<mosaic_0001>
module attributes {stable_mosaic.version = 11 : i64} {
  func.func @_squared_relu_kernel(%arg0: i32, %arg1: memref<1x2048xf32, #tpu.memory_space<vmem>>, %arg2: memref<1x2048xf32, #tpu.memory_space<vmem>>) attributes {dimension_semantics = [#tpu.dimension_semantics<parallel>], iteration_bounds = array<i64: 1>, scalar_prefetch = 0 : i64, scratch_operands = 0 : i64, tpu.core_type = #tpu.core_type<tc>, window_params = [{transform_indices = @transform_0, window_bounds = array<i64: 1, 2048>}, {transform_indices = @transform_1, window_bounds = array<i64: 1, 2048>}]} {
    %c0 = arith.constant 0 : index
    %c0_0 = arith.constant 0 : index
    %0 = vector.load %arg1[%c0, %c0_0] : memref<1x2048xf32, #tpu.memory_space<vmem>>, vector<1x2048xf32>
    %cst = arith.constant 0.000000e+00 : f32
    %1 = vector.broadcast %cst : f32 to vector<1x2048xf32>
    %2 = arith.maximumf %0, %1 : vector<1x2048xf32>
    %3 = arith.mulf %2, %2 : vector<1x2048xf32>
    %c0_1 = arith.constant 0 : index
    %c0_2 = arith.constant 0 : index
    %4 = vector.load %arg2[%c0_1, %c0_2] : memref<1x2048xf32, #tpu.memory_space<vmem>>, vector<1x2048xf32>
    tpu.vector_store %arg2[%c0_1, %c0_2], %3 {strides = array<i32>} : memref<1x2048xf32, #tpu.memory_space<vmem>>, vector<1x2048xf32>,
    return
  }
  func.func @transform_0(%arg0: i32) -> (i32, i32) {
    %c0_i32 = arith.constant 0 : i32
    %c0_i32_0 = arith.constant 0 : i32
    return %arg0, %c0_i32 : i32, i32
  }
  func.func @transform_1(%arg0: i32) -> (i32, i32) {
    %c0_i32 = arith.constant 0 : i32
    %c0_i32_0 = arith.constant 0 : i32
    return %arg0, %c0_i32 : i32, i32
  }
}

</mosaic_0001>

<bundles_post_ra>
// kernel: tpu_custom_call.1
= control target key start
LH: loop header
LB: loop body
LE: loop exit
PB: predicated region body
PF: predicated region fallthrough
CT: control target
= control target key end

     0   :  { %6 = vsyncpa [#allocation3], 0  ;;  %s130_s0 = inlined_call_operand.hbm [shape: f32[1,2048], index: 0, kind: input, shape index: {}]   ;;  %s131_s1 = inlined_call_operand.hbm [shape: f32[1,2048], index: 1, kind: output, shape index: {}]  }
   0x1   :  { %7 = vsyncpa [#allocation4], 0  ;;  %s94_s6 = smov [#allocation2]   ;;  %s46_s10 = scalar_lea.hbm %s130_s0, 256 }
   0x2   :  { %s14_s7 = sshll.u32 %s94_s6, 4  ;;  %p47_p0 = scmp.ne.s32.totalorder %s130_s0, %s46_s10  ;;  %s15_s7 = int_to_ptr.vmem [resolvable:$true] %s14_s7 }
   0x3   :  { %p50_p1 = scmp.lt.u32.totalorder %s46_s10, %s130_s0 }
   0x5   :  { %p52_p2 = pnand %p50_p1, %p47_p0 }
   0x7   :  { %55 = shalt.err (!%p52_p2)
}
   0x8   :  { %s56_s15 = scalar_lea.vmem %s15_s7, 256  ;;  %p61_p4 = scmp.lt.s32.totalorder %s15_s7, %s15_s7 }
   0x9   :  { %p57_p3 = scmp.ne.s32.totalorder %s15_s7, %s56_s15  ;;  %p62_p5 = scmp.lt.s32.totalorder %s56_s15, %s56_s15 }
   0xb   :  { %p63_p6 = por %p62_p5, %p61_p4 }
   0xd   :  { %p64_p7 = pnand %p63_p6, %p57_p3 }
   0xf   :  { %67 = shalt.err (!%p64_p7)
}
  0x10   :  { %17 = dma.hbm_to_vmem [thread:$0]  %s130_s0, 256, %s15_s7, [#allocation3]  }
  0x11   :  { %90 = dma.done.wait [#allocation3], 256  }
  0x12   :  { %91 = vsyncadd [#allocation3], 4294967040  ;;  %v21_v0 = vld [vmem:[#allocation2] sm:$0xff]  ;;  %v22_v1 = vld [vmem:[#allocation2 + $0x8] sm:$0xff]  ;;  %s95_s18 = smov [#allocation5]  }
  0x13   :  { %s35_s19 = sshll.u32 %s95_s18, 4  ;;  %v23_v2 = vmax.f32 %v21_v0, 0.0  ;;  %v24_v3 = vmax.f32 %v22_v1, 0.0  ;;  %s36_s19 = int_to_ptr.vmem [resolvable:$true] %s35_s19 }
  0x14   :  { %s68_s20 = scalar_lea.vmem %s36_s19, 256  ;;  %p73_p9 = scmp.lt.s32.totalorder %s36_s19, %s36_s19 }
  0x15   :  { %v25_v4 = vmul.f32 %v23_v2, %v23_v2  ;;  %v26_v5 = vmul.f32 %v24_v3, %v24_v3  ;;  %p69_p8 = scmp.ne.s32.totalorder %s36_s19, %s68_s20  ;;  %p74_p10 = scmp.lt.s32.totalorder %s68_s20, %s68_s20 }
  0x17   :  { %27 = vst [vmem:[#allocation5] sm:$0xff] %v25_v4  ;;  %28 = vst [vmem:[#allocation5 + $0x8] sm:$0xff] %v26_v5  ;;  %p75_p11 = por %p74_p10, %p73_p9 }
  0x19   :  { %p76_p12 = pnand %p75_p11, %p69_p8 }
  0x1b   :  { %79 = shalt.err (!%p76_p12)
}
  0x1c   :  { %s80_s22 = scalar_lea.hbm %s131_s1, 256 }
  0x1d   :  { %p81_p13 = scmp.ne.s32.totalorder %s131_s1, %s80_s22  ;;  %p84_p0 = scmp.lt.u32.totalorder %s80_s22, %s131_s1 }
  0x1f   :  { %p86_p1 = pnand %p84_p0, %p81_p13 }
  0x21   :  { %89 = shalt.err (!%p86_p1)
}
  0x22   :  { %38 = dma.vmem_to_hbm [thread:$0]  %s36_s19, 256, %s131_s1, [#allocation4]  }
  0x23   :  { %92 = dma.done.wait [#allocation4], 256  }
  0x24   :  { %93 = vsyncadd [#allocation4], 4294967040 }
  0x25   :  { %42 = vsyncpa [#allocation3], 1 }
  0x26   :  { %43 = vsyncpa [#allocation4], 1 }

</bundles_post_ra>
